<compile_context>
chip_gen: v7x
topology: tpu7x:2x2x1
jax: 0.10.0
libtpu: 0.0.40
codegen_flags: <defaults>
</compile_context>

<pallas_src>
import jax
import jax.numpy as jnp
from jax.experimental import pallas as pl
from jax.experimental.pallas import tpu as pltpu


def _hbm_copy_kernel(x_hbm, o_hbm, sem):
    # Single whole-array HBM->HBM DMA: no VMEM staging, no tiling constraints,
    # no per-grid-step overhead.  Works for any shape / dtype / element count.
    cp = pltpu.make_async_copy(x_hbm, o_hbm, sem)
    cp.start()
    cp.wait()


def _pallas_materialized_copy(x: jax.Array) -> jax.Array:
    """Materialize a fresh copy of `x` via one HBM->HBM DMA inside a kernel."""
    return pl.pallas_call(
        _hbm_copy_kernel,
        out_shape=jax.ShapeDtypeStruct(x.shape, x.dtype),
        in_specs=[pl.BlockSpec(memory_space=pl.ANY)],   # leave input in HBM
        out_specs=pl.BlockSpec(memory_space=pl.ANY),    # output stays in HBM
        scratch_shapes=[pltpu.SemaphoreType.DMA(())],
    )(x)


def get_backprop_loss(loss_main: jax.Array, *, materialize: bool = False) -> jax.Array:
    """Pallas equivalent of Model.get_backprop_loss: returns loss.main.

    The reference semantics are a pure passthrough, so the default (and
    fastest) path moves zero bytes.  Set materialize=True only if a distinct
    output buffer is explicitly required; that path issues a single
    HBM->HBM DMA (the minimum possible traffic for a real copy).
    """
    if not materialize:
        return loss_main
    return _pallas_materialized_copy(loss_main)


class PallasModel:
    """Mirror of the abstract fandak Model (no parameters registered)."""

    def __init__(self, cfg=None):
        self.cfg = cfg

    def get_params(self, original_lr: float):
        # Base class registers no parameters; keep the same structure.
        return [{"params": [], "lr": original_lr}]

    def get_backprop_loss(self, loss_main: jax.Array, *, materialize: bool = False) -> jax.Array:
        return get_backprop_loss(loss_main, materialize=materialize)

    def forward(self, batch):
        raise NotImplementedError  # abstract in the reference module

    def loss(self, batch, forward_out):
        raise NotImplementedError  # abstract in the reference module


if __name__ == "__main__":
    key = jax.random.PRNGKey(0)
    # Small input consistent with a typical batch-shaped loss tensor: NCHW (2,4,16,16)
    x = jax.random.normal(key, (2, 4, 16, 16), dtype=jnp.float32)

    model = PallasModel(cfg=None)

    # Common (zero-cost) passthrough path — semantically identical to the spec.
    y_fast = model.get_backprop_loss(x)
    assert y_fast.shape == x.shape and y_fast.dtype == x.dtype
    assert bool(jnp.allclose(y_fast, x))

    # Explicit Pallas kernel path: single HBM->HBM DMA copy.
    y = model.get_backprop_loss(x, materialize=True)
    y = jax.block_until_ready(y)
    assert y.shape == x.shape and y.dtype == x.dtype
    assert bool(jnp.allclose(y, x))

    # Awkward element count (15 elements): the DMA path needs no padding or
    # (8,128) factorization — same single-descriptor copy.
    x2 = jax.random.normal(jax.random.PRNGKey(0), (3, 5), dtype=jnp.float32)
    y2 = jax.block_until_ready(model.get_backprop_loss(x2, materialize=True))
    assert y2.shape == x2.shape and y2.dtype == x2.dtype
    assert bool(jnp.allclose(y2, x2))

    print("KERNEL_OK")
</pallas_src>

<mosaic_0001>
module attributes {stable_mosaic.version = 11 : i64} {
  func.func @_hbm_copy_kernel(%arg0: memref<2x4x16x16xf32, #tpu.memory_space<any>>, %arg1: memref<2x4x16x16xf32, #tpu.memory_space<any>>, %arg2: memref<!tpu.dma_semaphore, #tpu.memory_space<semaphore_mem>>) attributes {dimension_semantics = [], scalar_prefetch = 0 : i64, scratch_operands = 1 : i64, tpu.core_type = #tpu.core_type<tc>} {
    tpu.enqueue_dma source(%arg0 : memref<2x4x16x16xf32, #tpu.memory_space<any>>) target(%arg1 : memref<2x4x16x16xf32, #tpu.memory_space<any>>) target_semaphore(%arg2 : memref<!tpu.dma_semaphore, #tpu.memory_space<semaphore_mem>>)
    tpu.wait_dma2 semaphore(%arg2 : memref<!tpu.dma_semaphore, #tpu.memory_space<semaphore_mem>>) src(%arg0 : memref<2x4x16x16xf32, #tpu.memory_space<any>>) dst(%arg1 : memref<2x4x16x16xf32, #tpu.memory_space<any>>)
    return
  }
}

</mosaic_0001>

<bundles_post_ra>
// kernel: tpu_custom_call.1
= control target key start
LH: loop header
LB: loop body
LE: loop exit
PB: predicated region body
PF: predicated region fallthrough
CT: control target
= control target key end

     0   :  { %s36_s6 = smov [#allocation2]   ;;  %s37_s7 = smov [#allocation3]   ;;  %s55_s0 = inlined_call_operand.hbm [shape: f32[2,4,16,16], index: 0, kind: input, shape index: {}]   ;;  %s56_s1 = inlined_call_operand.hbm [shape: f32[2,4,16,16], index: 1, kind: output, shape index: {}]  }
   0x1   :  { %s38_s8 = smov 0  }
   0x2   :  { %18 = dma.general %s55_s0, 2048, %s56_s1, %s36_s6, %s37_s7, [#allocation4], %s38_s8, 0  }
   0x3   :  { %34 = dma.done.wait [#allocation2], 2048 }
   0x4   :  { %35 = vsyncadd [#allocation2], 4294965248 }
   0x5   :  { %24 = vsyncmov [#allocation2] }
   0x8   :  { %s25_s13 = vpop.sfrf %24 }
   0x9   :  { %p30_p0 = scmp.ne.s32.totalorder %s25_s13, 0 }
   0xb   :  { %29 = shalt.err (%p30_p0)  }

</bundles_post_ra>
